<compile_context>
chip_gen: v6e
topology: v6e:2x2x1
jax: 0.10.0
libtpu: 0.0.40
codegen_flags: <defaults>
</compile_context>

<pallas_src>
import functools

import jax
import jax.numpy as jnp
from jax.experimental import pallas as pl
from jax.experimental.pallas import tpu as pltpu


def _round_up(x, m):
    return ((x + m - 1) // m) * m


def _gat_fused_kernel(h_ref, wv_ref, adj_ref, out_ref):
    """One grid step == one tile of destination nodes.

    h_ref   : (N, in_dim)      node features, shared across tiles (constant index map)
    wv_ref  : (in_dim, H*D)    fused, pre-transposed value weights (shared)
    adj_ref : (TILE_DST, N)    bf16 0/1 adjacency rows adj[dst, src] for this dst tile
    out_ref : (TILE_DST, H*D)  lane-dense output slab (heads already concatenated)
    """
    # v_all = h @ Wv_all.  Recomputed per dst tile: tiny vs. the adj matmul for realistic
    # tiles, and keeps the kernel free of cross-step scratch state so the dst grid axis can
    # be "parallel" (safe for v7x megacore sharding).
    v = jnp.dot(h_ref[...], wv_ref[...], preferred_element_type=jnp.float32)

    # alpha == 1 for every edge (softmax over a singleton mailbox dim), so the reduce step is
    # a plain masked neighbor sum: out[dst] = sum_src adj[dst, src] * v[src].
    adj = adj_ref[...].astype(jnp.float32)  # 0/1 mask is exact in bf16; cast is cheap VPU filler
    out_ref[...] = jnp.dot(adj, v, preferred_element_type=jnp.float32).astype(out_ref.dtype)


@functools.partial(jax.jit, static_argnames=("tile_dst",))
def multi_head_gat_layer(h, wq, wk, wv, adj, *, tile_dst=256):
    """h: (N, in_dim) f32; wq/wk/wv: (H, hidden, in_dim) f32 (nn.Linear weight layout);
    adj: (N, N) with adj[dst, src] = 1 iff edge src->dst.  Returns (N, H*hidden) f32."""
    # wq / wk are accepted for API parity with the torch module but provably do not influence
    # the output (softmax over the singleton mailbox dim => alpha == 1 on every edge).
    del wq, wk
    num_heads, hidden_dim, in_dim = wv.shape
    n = h.shape[0]
    hd = num_heads * hidden_dim

    # Fused value weight (in_dim, H*hidden): column block hh is Wv_hh^T, so the fused matmul
    # directly produces the head-concatenated feature layout (no transpose/reshape afterwards).
    wv_all = jnp.transpose(wv, (2, 0, 1)).reshape(in_dim, hd).astype(jnp.float32)

    # dst-axis tiling.  adj is stored bf16, so align the dst tile to 16 sublanes.
    sublane = 16
    tile = max(sublane, (min(tile_dst, _round_up(n, sublane)) // sublane) * sublane)
    n_pad = _round_up(n, tile)

    adj_c = adj.astype(jnp.bfloat16)  # 0/1 exact in bf16 -> half the HBM bytes for the big input
    if n_pad != n:
        adj_c = jnp.pad(adj_c, ((0, n_pad - n), (0, 0)))

    grid = (n_pad // tile,)

    # VMEM estimate (double-buffered blocks + in-kernel temporaries), clipped to v7x's 64 MiB.
    est = (2 * tile * n * 2        # adj tile (bf16), double-buffered
           + 2 * n * in_dim * 4    # h
           + 2 * in_dim * hd * 4   # wv_all
           + 2 * tile * hd * 4     # out tile
           + n * hd * 4            # v temporary
           + tile * n * 4)         # adj f32 cast temporary
    vmem_limit = int(min(max(2 * est, 4 << 20), 64 << 20))

    out = pl.pallas_call(
        _gat_fused_kernel,
        out_shape=jax.ShapeDtypeStruct((n_pad, hd), jnp.float32),
        grid_spec=pltpu.PrefetchScalarGridSpec(
            num_scalar_prefetch=0,
            grid=grid,
            in_specs=[
                pl.BlockSpec((n, in_dim), lambda i: (0, 0)),    # h (shared, fetched once)
                pl.BlockSpec((in_dim, hd), lambda i: (0, 0)),   # fused Wv (shared)
                pl.BlockSpec((tile, n), lambda i: (i, 0)),      # adj rows for this dst tile
            ],
            out_specs=pl.BlockSpec((tile, hd), lambda i: (i, 0)),  # lane-dense output slab
        ),
        compiler_params=pltpu.CompilerParams(
            dimension_semantics=("parallel",),   # independent dst tiles -> megacore on v7x
            vmem_limit_bytes=vmem_limit,
        ),
    )(h.astype(jnp.float32), wv_all, adj_c)

    # TODO(synk): for large sparse graphs, replace the dense adj matmul with a CSR scalar-prefetch
    # gather (PrefetchScalarGridSpec, num_scalar_prefetch=2) so HBM traffic scales with edges, not N^2.
    return out[:n]


def _reference(h, wq, wk, wv, adj):
    """Pure-JAX mirror of the PyTorch/DGL forward (including the softmax-over-singleton quirk)."""
    outs = []
    for hh in range(wq.shape[0]):
        q = h @ wq[hh].T
        k = h @ wk[hh].T
        v = h @ wv[hh].T
        s = k @ q.T                                   # s[dst, src] = <k[dst], q[src]>
        e = jnp.where(s > 0, s, 0.2 * s)              # leaky_relu(0.2)
        alpha = jax.nn.softmax(e[..., None], axis=-1)[..., 0]   # singleton softmax -> all ones
        outs.append((adj * alpha) @ v)                # sum over in-neighbors
    return jnp.concatenate(outs, axis=-1)


if __name__ == "__main__":
    # Small, module-consistent shapes.  H*hidden = 128 -> lane-dense output slab.
    N, IN_DIM, HIDDEN_DIM, NUM_HEADS = 32, 16, 32, 4

    key = jax.random.PRNGKey(0)
    k_h, k_q, k_k, k_v = jax.random.split(key, 4)

    h = jax.random.normal(k_h, (N, IN_DIM), dtype=jnp.float32)
    # nn.Linear(in_dim, hidden_dim, bias=False) weight shape: (hidden_dim, in_dim)
    scale = 1.0 / jnp.sqrt(IN_DIM)
    wq = jax.random.uniform(k_q, (NUM_HEADS, HIDDEN_DIM, IN_DIM), jnp.float32, -scale, scale)
    wk = jax.random.uniform(k_k, (NUM_HEADS, HIDDEN_DIM, IN_DIM), jnp.float32, -scale, scale)
    wv = jax.random.uniform(k_v, (NUM_HEADS, HIDDEN_DIM, IN_DIM), jnp.float32, -scale, scale)

    # Deterministic graph: directed ring + self-loops (every node has >= 1 incoming edge,
    # matching DGL's requirement that the reduce step fires for every node whose 'h' we read).
    src = jnp.arange(N)
    dst = (jnp.arange(N) + 1) % N
    adj = jnp.zeros((N, N), dtype=jnp.float32)
    adj = adj.at[dst, src].set(1.0)                        # edge src -> dst
    adj = adj.at[jnp.arange(N), jnp.arange(N)].set(1.0)    # self-loops

    out = multi_head_gat_layer(h, wq, wk, wv, adj, tile_dst=16)  # grid = (2,) to exercise tiling
    out = jax.block_until_ready(out)

    ref = _reference(h, wq, wk, wv, adj)
    assert out.shape == (N, NUM_HEADS * HIDDEN_DIM)
    assert jnp.allclose(out, ref, atol=1e-4, rtol=1e-4), "Pallas output mismatch vs reference"

    print("KERNEL_OK")
</pallas_src>

<mosaic_0001>
module attributes {stable_mosaic.version = 11 : i64} {
  func.func @_gat_fused_kernel(%arg0: i32, %arg1: memref<32x16xf32, #tpu.memory_space<vmem>>, %arg2: memref<16x128xf32, #tpu.memory_space<vmem>>, %arg3: memref<16x32xbf16, #tpu.memory_space<vmem>>, %arg4: memref<16x128xf32, #tpu.memory_space<vmem>>) attributes {dimension_semantics = [#tpu.dimension_semantics<parallel>], iteration_bounds = array<i64: 2>, scalar_prefetch = 0 : i64, scratch_operands = 0 : i64, tpu.core_type = #tpu.core_type<tc>, window_params = [{pipeline_mode = #tpu.pipeline_mode<synchronous>, transform_indices = @transform_0, window_bounds = array<i64: 32, 16>}, {pipeline_mode = #tpu.pipeline_mode<synchronous>, transform_indices = @transform_1, window_bounds = array<i64: 16, 128>}, {transform_indices = @transform_2, window_bounds = array<i64: 16, 32>}, {transform_indices = @transform_3, window_bounds = array<i64: 16, 128>}]} {
    %c0 = arith.constant 0 : index
    %c0_0 = arith.constant 0 : index
    %0 = vector.load %arg1[%c0, %c0_0] : memref<32x16xf32, #tpu.memory_space<vmem>>, vector<32x16xf32>
    %c0_1 = arith.constant 0 : index
    %c0_2 = arith.constant 0 : index
    %1 = vector.load %arg2[%c0_1, %c0_2] : memref<16x128xf32, #tpu.memory_space<vmem>>, vector<16x128xf32>
    %cst = arith.constant dense<0.000000e+00> : vector<32x128xf32>
    %2 = tpu.matmul %0, %1, %cst {dimension_numbers = #tpu.dot_dimension_numbers<[1], [0], [0], [1], [0, 0, 1, 1], [], []>} : vector<32x16xf32>, vector<16x128xf32>, vector<32x128xf32> -> vector<32x128xf32>
    %c0_3 = arith.constant 0 : index
    %c0_4 = arith.constant 0 : index
    %3 = vector.load %arg3[%c0_3, %c0_4] : memref<16x32xbf16, #tpu.memory_space<vmem>>, vector<16x32xbf16>
    %4 = arith.extf %3 : vector<16x32xbf16> to vector<16x32xf32>
    %cst_5 = arith.constant dense<0.000000e+00> : vector<16x128xf32>
    %5 = tpu.matmul %4, %2, %cst_5 {dimension_numbers = #tpu.dot_dimension_numbers<[1], [0], [0], [1], [0, 0, 1, 1], [], []>} : vector<16x32xf32>, vector<32x128xf32>, vector<16x128xf32> -> vector<16x128xf32>
    %c0_6 = arith.constant 0 : index
    %c0_7 = arith.constant 0 : index
    %6 = vector.load %arg4[%c0_6, %c0_7] : memref<16x128xf32, #tpu.memory_space<vmem>>, vector<16x128xf32>
    tpu.vector_store %arg4[%c0_6, %c0_7], %5 {strides = array<i32>} : memref<16x128xf32, #tpu.memory_space<vmem>>, vector<16x128xf32>,
    return
  }
  func.func @transform_0(%arg0: i32) -> (i32, i32) {
    %c0_i32 = arith.constant 0 : i32
    %c0_i32_0 = arith.constant 0 : i32
    %c0_i32_1 = arith.constant 0 : i32
    return %c0_i32, %c0_i32_0 : i32, i32
  }
  func.func @transform_1(%arg0: i32) -> (i32, i32) {
    %c0_i32 = arith.constant 0 : i32
    %c0_i32_0 = arith.constant 0 : i32
    %c0_i32_1 = arith.constant 0 : i32
    return %c0_i32, %c0_i32_0 : i32, i32
  }
  func.func @transform_2(%arg0: i32) -> (i32, i32) {
    %c0_i32 = arith.constant 0 : i32
    %c0_i32_0 = arith.constant 0 : i32
    return %arg0, %c0_i32 : i32, i32
  }
  func.func @transform_3(%arg0: i32) -> (i32, i32) {
    %c0_i32 = arith.constant 0 : i32
    %c0_i32_0 = arith.constant 0 : i32
    return %arg0, %c0_i32 : i32, i32
  }
}

</mosaic_0001>

<bundles_post_ra>
// kernel: multi_head_gat_layer.1
= control target key start
LH: loop header
LB: loop body
LE: loop exit
PB: predicated region body
PF: predicated region fallthrough
CT: control target
= control target key end

     0   :  { %8 = vsyncpa [#allocation3], 0  ;;  %s741_s0 = inlined_call_operand.vmem [shape: f32[32,16], index: 0, kind: input, shape index: {}]   ;;  %s742_s1 = inlined_call_operand.vmem [shape: f32[16,128], index: 1, kind: input, shape index: {}]   ;;  %s743_s2 = inlined_call_operand.vmem [shape: bf16[32,32], index: 2, kind: input, shape index: {}]   ;;  %s744_s3 = inlined_call_operand.hbm [shape: f32[32,128], index: 3, kind: output, shape index: {}]  }
   0x1   :  { %10 = vsyncpa [#allocation3 + $0x1], 0  ;;  %s622_s12 = smov 0   ;;  %s624_s13 = smov 0  }
   0x2   :  { %s626_s14 = smov 0   ;;  %s628_s15 = smov 0  }
   0x3 LB: > { %s643_s16 = sadd.s32 4294967295, %s597_s15   ;;  %s440_s17 = sadd.s32 4294967294, %s597_s15   ;;  %s597_s15 = sphi %s628_s15, %s750_s15   ;;  %s593_s14 = sphi %s626_s14, %s749_s14   ;;  %s589_s13 = sphi %s624_s13, %s748_s13   ;;  %s585_s12 = sphi %s622_s12, %s747_s12  }
   0x4   : > { %s647_s18 = sadd.s32 1, %s597_s15   ;;  %s91_s19 = sadd.s32 1, %s593_s14 }
   0x5   : > { %s88_s20 = ssub.s32 %s597_s15, %s647_s18  ;;  %p101_p0 = scmp.ne.s32.totalorder %s593_s14, %s589_s13 }
   0x6   : > { %p89_p1 = scmp.eq.s32.totalorder %s88_s20, 0  ;;  %p102_p2 = scmp.eq.s32.totalorder %s643_s16, 1 }
   0x7   : > { %p107_p3 = scmp.ne.s32.totalorder %s589_s13, %s585_s12  ;;  %p108_p4 = scmp.eq.s32.totalorder %s440_s17, 1 }
   0x8   : > { %s658_s21 = scalar_select %p89_p1, %s593_s14, %s91_s19  }
   0x9   : > { %p660_p5 = por %p102_p2, %p101_p0  ;;  %p664_p6 = por %p108_p4, %p107_p3 }
   0xa   : > { %p443_p7 = scmp.ge.s32.totalorder %s597_s15, 1  ;;  %p141_p8 = scmp.lt.s32.totalorder %s597_s15, 3 }
   0xc   : > { %p142_p9 = pnand %p443_p7, %p141_p8 }
   0xd   : > { %s445_s9 = sshll.u32 (!%p142_p9), %s643_s16, 1  ;;  %s162_s20 = sand.u32 (!%p142_p9), 1, %s589_s13  }
   0xe   : > { %145 = sbr.rel (%p142_p9) target bundleno = 438 (0x1b6), region = 32  ;;  %p166_p10 = scmp.lt.s32.totalorder (!%p142_p9), %s445_s9, 3 }
   0xf   : > { %s444_s24 = sshll.u32 (!%p142_p9), %s162_s20, 4  ;;  %s458_s27 = sshll.u32 (!%p142_p9), %s643_s16, 8 }
  0x10   : > { %s164_s25 = scalar_lea.vmem (!%p142_p9), [#allocation2], %s444_s24  ;;  %s699_s30 = scalar_lea.hbm (!%p142_p9), %s744_s3, %s458_s27 }
  0x11   : > { %s378_s26 = sshll.u32 (!%p142_p9), %s164_s25, 4  ;;  %s701_s4 = scalar_lea.sflag (!%p142_p9), [#allocation3], %s162_s20  ;;  %s694_s26 = int_to_ptr.vmem [resolvable:$true] %s378_s26 }
  0x12   : > { %s537_s5 = scalar_lea.vmem (!%p142_p9), %s694_s26, 256  ;;  %s599_s16 = smov (!%p142_p9), [#allocation2]  }
  0x13   : > { %v177_v0 = vld [vmem:[%s742_s1 + $0x8] sm:$0xff]  ;;  %v176_v1 = vld [vmem:[%s742_s1] sm:$0xff]  ;;  %vm178_vm0 = vcmask 130048   ;;  %v174_v4 = vld [vmem:[%s741_s0 + $0x10] sm:$0xff]  ;;  %s752_s9 = smov (!%p166_p10, %s445_s9), 3  ;;  %vm280_vm1 = vcmask 261120   ;;  %p538_p11 = scmp.ne.s32.totalorder %s694_s26, %s537_s5 }
  0x14   : > { %v172_v2 = vld [vmem:[%s741_s0] sm:$0xff]  ;;  %475 = vmatprep.subr.mxu0 %v177_v0  ;;  %v173_v3 = vld [vmem:[%s741_s0 + $0x8] sm:$0xff]  ;;  %v175_v5 = vld [vmem:[%s741_s0 + $0x18] sm:$0xff]  ;;  %s446_s10 = sshll.u32 %s752_s9, 2  ;;  %s541_s6 = sshll.u32 %s599_s16, 4  ;;  %s542_s6 = int_to_ptr.vmem [resolvable:$false] %s541_s6 }
  0x15   : > { %479 = vmatprep.mubr.msk.f32.mxu0 %vm178_vm0, %v172_v2  ;;  %476 = vmatpush3.msra.mxu0 %v177_v0  ;;  %s169_s19 = scalar_lea.vmem %s743_s2, %s446_s10  ;;  %p539_p12 = pnand %p538_p11, %p660_p5 }
  0x16   : > { %477 = vmatprep.subr.mxu0 %v176_v1  ;;  %v460_v6 = vld [vmem:[%s169_s19] sm:$0xff]   ;;  %s543_s7 = scalar_lea.vmem %s542_s6, 512  ;;  %p544_p0 = scmp.lt.s32.totalorder %s694_s26, %s542_s6 }
  0x17   : > { %478 = vmatpush3.msra.mxu0 %v176_v1  ;;  %v461_v7 = vunpack.c.l.bf16 %v460_v6  ;;  %v462_v12 = vunpack.c.h.bf16 %v460_v6  ;;  %p540_p13 = pneg %p539_p12  ;;  %p545_p1 = scmp.lt.s32.totalorder %s543_s7, %s537_s5 }
  0x18   : > { %480 = vmatmul.mubr.msk.f32.vlgmr.msra.gmra.mxu0 %vm178_vm0, %v173_v3 }
  0x19   : > { %482 = vmatprep.mubr.msk.f32.mxu0 %vm178_vm0, %v174_v4  ;;  %493 = vmatprep.mubr.msk.f32.mxu1 %vm280_vm1, %v461_v7  ;;  %p546_p2 = por %p545_p1, %p544_p0 }
  0x1b   : > { %p547_p3 = pnand %p546_p2, %p540_p13 }
  0x1c   : > { %483 = vmatmul.mubr.msk.f32.gmra.mxu0 %vm178_vm0, %v175_v5 }
  0xd8   : > { %v481_v8 = vpop.f32.mrf.mxu0 }
  0xda   : > { %v257_v9 = vpop.f32.mrf.mxu0 }
  0xdc   : > { %v484_v10 = vpop.f32.mrf.mxu0 }
  0xdd   : > { %485 = vmatprep.subr.mxu1 %v484_v10 }
  0xde   : > { %v267_v11 = vpop.f32.mrf.mxu0  ;;  %486 = vmatpush3.msra.mxu1 %v484_v10 }
  0xdf   : > { %487 = vmatprep.subr.mxu1 %v267_v11 }
  0xe0   : > { %488 = vmatpush3.msra.mxu1 %v267_v11 }
  0xe1   : > { %489 = vmatprep.subr.mxu1 %v481_v8 }
  0xe2   : > { %490 = vmatpush3.msra.mxu1 %v481_v8 }
  0xe3   : > { %491 = vmatprep.subr.mxu1 %v257_v9 }
  0xe4   : > { %492 = vmatpush3.msra.mxu1 %v257_v9 }
  0xe5   : > { %494 = vmatmul.mubr.msk.f32.vlgmr.msra.gmra.mxu1 %vm280_vm1, %v462_v12 }
 0x1a5   : > { %v495_v13 = vpop.f32.mrf.mxu1 }
 0x1a6   : > { %363 = vst [vmem:[%s164_s25 + $0x8] sm:$0xff] %v495_v13 }
 0x1a7   : > { %v353_v14 = vpop.f32.mrf.mxu1 }
 0x1a8   : > { %362 = vst [vmem:[%s164_s25] sm:$0xff] %v353_v14 }
 0x1a9   : > { %550 = shalt.err (!%p547_p3)
}
 0x1aa   : > { %s551_s8 = scalar_lea.hbm %s699_s30, 256  ;;  %s555_s11 = scalar_lea.hbm %s744_s3, 512 }
 0x1ab   : > { %p552_p4 = scmp.ne.s32.totalorder %s699_s30, %s551_s8  ;;  %p556_p9 = scmp.lt.s32.totalorder %s699_s30, %s744_s3 }
 0x1ac   : > { %p557_p10 = scmp.lt.s32.totalorder %s555_s11, %s551_s8 }
 0x1ad   : > { %p553_p7 = pnand %p552_p4, %p660_p5 }
 0x1ae   : > { %p558_p11 = por %p557_p10, %p556_p9 }
 0x1af   : > { %p554_p8 = pneg %p553_p7 }
 0x1b1   : > { %p559_p12 = pnand %p558_p11, %p554_p8 }
 0x1b3   : > { %562 = shalt.err (!%p559_p12)
}
 0x1b4   : > { %s600_s20 = smov 128   ;;  %s601_s24 = smov 8  }
 0x1b5   : > { %496 = dma.vmem_to_hbm [thread:$0]  (%p660_p5), %s694_s26, 256, %s699_s30, %s701_s4, %s600_s20, %s600_s20, %s601_s24  }
 0x1b6 PF: > { %p502_p13 = scmp.ge.s32.totalorder %s597_s15, 2  ;;  %s393_s25 = sand.u32 1, %s585_s12  }
 0x1b7   : > { %s394_s27 = scalar_lea.sflag [#allocation3], %s393_s25 }
 0x1b8   : > { %p499_p0 = pnand %p502_p13, %p664_p6 }
 0x1ba   : > { %p500_p1 = pneg %p499_p0 }
 0x1bc   : > { %580 = dma.done.wait (%p500_p1), %s394_s27, 256  }
 0x1bd   : > { %582 = vsyncadd (%p500_p1), %s394_s27, 4294967040  ;;  %p13_p2 = scmp.ge.s32.totalorder %s647_s18, 4   ;;  %s747_s12 = smov %s589_s13 }
 0x1be   : > { %s748_s13 = smov %s593_s14  ;;  %s749_s14 = smov %s658_s21 }
 0x1bf   : > { %s750_s15 = smov %s647_s18  ;;  %15 = sbr.rel (!%p13_p2) target bundleno = 3 (0x3), region = 67 }
 0x1c4   :  { %399 = vsyncpa [#allocation3], 1 }
 0x1c5   :  { %401 = vsyncpa [#allocation3 + $0x1], 1 }

</bundles_post_ra>
